<compile_context>
chip_gen: v5e
topology: v5e:2x2
jax: 0.10.0
libtpu: 0.0.40
codegen_flags: <defaults>
</compile_context>

<pallas_src>
import jax
import jax.numpy as jnp
from jax.experimental import pallas as pl
from jax.experimental.pallas import tpu as pltpu

_LANES = 128
_SUBLANES = 8
_PAD_LOGIT = -1e4  # exp(-|x|)=0, sigmoid=0, BCE term=0 -> zero contribution


def _round_up(v, m):
    return (v + m - 1) // m * m


def _make_bce_dice_kernel(bn, tile, d_row, ragged, approx):
    """Kernel over one (bn, tile) input block; accumulates per-row partials."""
    sub_h = min(bn, _SUBLANES)          # strip height (rows)
    n_sub = max(1, bn // _SUBLANES)     # 8-row sub-blocks inside the block
    n_strips = tile // _LANES           # 128-lane strips inside the block

    def kernel(x_ref, t_ref, bce_ref, inter_ref, ssum_ref, tsum_ref):
        j = pl.program_id(1)

        @pl.when(j == 0)
        def _init():
            bce_ref[...] = jnp.zeros_like(bce_ref)
            inter_ref[...] = jnp.zeros_like(inter_ref)
            ssum_ref[...] = jnp.zeros_like(ssum_ref)
            tsum_ref[...] = jnp.zeros_like(tsum_ref)

        if ragged:
            col0 = j * tile
            lane = jax.lax.broadcasted_iota(jnp.int32, (sub_h, _LANES), 1)
        zero = jnp.zeros((sub_h, _LANES), jnp.float32)

        for sb in range(n_sub):
            r0 = sb * _SUBLANES

            def strip(k, carry, r0=r0):
                bce_a, int_a, ss_a, ts_a = carry
                c0 = pl.multiple_of(k * _LANES, _LANES)
                x = x_ref[pl.ds(r0, sub_h), pl.ds(c0, _LANES)].astype(jnp.float32)
                t = t_ref[pl.ds(r0, sub_h), pl.ds(c0, _LANES)].astype(jnp.float32)
                if ragged:
                    valid = (col0 + c0 + lane) < d_row
                    x = jnp.where(valid, x, _PAD_LOGIT)
                    t = jnp.where(valid, t, 0.0)
                e = jnp.exp(-jnp.abs(x))                      # shared transcendental
                if approx:
                    inv1pe = pl.reciprocal(1.0 + e, approx=True)   # EUP slot
                else:
                    inv1pe = 1.0 / (1.0 + e)
                sig = jnp.where(x >= 0.0, inv1pe, e * inv1pe)      # sigmoid(x)
                bce_a = bce_a + (jnp.maximum(x, 0.0) - x * t + jnp.log1p(e))
                int_a = int_a + sig * t
                ss_a = ss_a + sig
                ts_a = ts_a + t
                return bce_a, int_a, ss_a, ts_a

            unroll = 8 if n_strips >= 8 else n_strips
            bce_a, int_a, ss_a, ts_a = jax.lax.fori_loop(
                0, n_strips, strip, (zero, zero, zero, zero), unroll=unroll)

            rs = pl.ds(r0, sub_h)
            bce_ref[rs, :] += bce_a
            inter_ref[rs, :] += int_a
            ssum_ref[rs, :] += ss_a
            tsum_ref[rs, :] += ts_a

    return kernel


def bce_dice_loss(inputs, target, *, smooth=1e-5, step_bytes=4 << 20,
                  tile_d=None, pack_sublanes=True, approx_sigmoid=True):
    """0.5 * mean BCE-with-logits + 0.5 * (1 - mean soft-Dice)."""
    n = int(inputs.shape[0])
    d = 1
    for s in inputs.shape[1:]:
        d *= int(s)

    x2 = inputs.reshape(n, d)            # keep native dtypes (no HBM up-cast)
    t2 = target.reshape(n, d)

    # --- small-batch sublane packing: view each sample as `rps` rows (free) --
    rps = 1
    if pack_sublanes and n < _SUBLANES and d >= 2 * _LANES:
        for cand in (16, 8, 4, 2):
            if d % cand == 0 and d // cand >= _LANES:
                rps = cand
                break
    rows = n * rps
    d_row = d // rps
    if rps > 1:
        x2 = x2.reshape(rows, d_row)
        t2 = t2.reshape(rows, d_row)

    bytes_pe = x2.dtype.itemsize + t2.dtype.itemsize
    d128 = _round_up(d_row, _LANES)

    # --- block sizing: each grid step should move ~step_bytes of input -------
    bn = rows if rows < _SUBLANES else _SUBLANES
    if tile_d is None:
        tile = max(_LANES, step_bytes // (bn * bytes_pe) // _LANES * _LANES)
    else:
        tile = _round_up(tile_d, _LANES)
    tile = min(tile, d128)
    if tile_d is None and rows >= 2 * _SUBLANES and tile == d128:
        # Whole feature dim fits in one tile: widen the batch block instead,
        # but keep >=2 blocks on the "parallel" axis (v7x megacore) and bound
        # the in-kernel sub-block count.
        want = max(_SUBLANES,
                   step_bytes // (tile * bytes_pe) // _SUBLANES * _SUBLANES)
        cap = max(_SUBLANES, (rows // 2) // _SUBLANES * _SUBLANES)
        bn = int(min(want, 64, cap))
    # Note: if rows < 16 and packing was impossible, the parallel axis has a
    # single block and one v7x TensorCore idles (rare corner; acceptable).

    num_nb = pl.cdiv(rows, bn)
    num_db = pl.cdiv(d_row, tile)
    rows_pad = num_nb * bn
    ragged = (d_row % tile) != 0

    # --- VMEM: double-buffered input blocks + resident partial outputs -------
    in_buf = 2 * bn * tile * x2.dtype.itemsize + 2 * bn * tile * t2.dtype.itemsize
    out_buf = 4 * 2 * bn * _LANES * 4
    vmem_limit = min(int(in_buf + out_buf) + (8 << 20), 96 << 20)

    kernel = _make_bce_dice_kernel(bn, tile, d_row, ragged, approx_sigmoid)
    acc = jax.ShapeDtypeStruct((rows_pad, _LANES), jnp.float32)

    grid_spec = pltpu.PrefetchScalarGridSpec(
        num_scalar_prefetch=0,
        grid=(num_nb, num_db),
        in_specs=[pl.BlockSpec((bn, tile), lambda i, j: (i, j)),
                  pl.BlockSpec((bn, tile), lambda i, j: (i, j))],
        out_specs=[pl.BlockSpec((bn, _LANES), lambda i, j: (i, 0))] * 4,
    )

    bce_p, inter_p, ssum_p, tsum_p = pl.pallas_call(
        kernel,
        out_shape=(acc, acc, acc, acc),
        grid_spec=grid_spec,
        compiler_params=pltpu.CompilerParams(
            dimension_semantics=("parallel", "arbitrary"),
            vmem_limit_bytes=vmem_limit,
        ),
    )(x2, t2)

    # --- tiny finalize in plain JAX (a few KiB) -------------------------------
    bce = jnp.sum(bce_p[:rows]) / (n * d)
    inter = jnp.sum(inter_p[:rows], axis=1).reshape(n, rps).sum(axis=1)
    ssum = jnp.sum(ssum_p[:rows], axis=1).reshape(n, rps).sum(axis=1)
    tsum = jnp.sum(tsum_p[:rows], axis=1).reshape(n, rps).sum(axis=1)
    dice = (2.0 * inter + smooth) / (ssum + tsum + smooth)
    dice = 1.0 - jnp.sum(dice) / n
    return 0.5 * bce + 0.5 * dice


def _reference(inputs, target):
    # pure-JAX reference (matches the PyTorch module semantics)
    x = inputs.astype(jnp.float32)
    t = target.astype(jnp.float32)
    bce = jnp.mean(jnp.maximum(x, 0.0) - x * t + jnp.log1p(jnp.exp(-jnp.abs(x))))
    smooth = 1e-5
    n = x.shape[0]
    s = jax.nn.sigmoid(x).reshape(n, -1)
    t2 = t.reshape(n, -1)
    inter = jnp.sum(s * t2, axis=1)
    dice = (2.0 * inter + smooth) / (jnp.sum(s, axis=1) + jnp.sum(t2, axis=1) + smooth)
    dice = 1.0 - jnp.sum(dice) / n
    return 0.5 * bce + 0.5 * dice


if __name__ == "__main__":
    key = jax.random.PRNGKey(0)
    k1, k2, k3, k4 = jax.random.split(key, 4)

    # Case 1: module-sized example (N=2, C=4, H=W=16 -> D=1024).
    # Small batch -> sublane packing (16 rows x 128) and 2 parallel blocks.
    N, C, H, W = 2, 4, 16, 16
    logits = jax.random.normal(k1, (N, C, H, W), dtype=jnp.float32)
    target = (jax.random.uniform(k2, (N, C, H, W)) > 0.5).astype(jnp.float32)
    ref = _reference(logits, target)

    loss_exact = bce_dice_loss(logits, target, approx_sigmoid=False)
    jax.block_until_ready(loss_exact)
    assert jnp.allclose(loss_exact, ref, atol=1e-5, rtol=1e-5), (loss_exact, ref)

    loss_approx = bce_dice_loss(logits, target, approx_sigmoid=True)
    jax.block_until_ready(loss_approx)
    assert jnp.allclose(loss_approx, ref, atol=5e-3, rtol=0.0), (loss_approx, ref)

    # Case 2: ragged shapes (D=969, not a multiple of 128; N=10 spans two batch
    # blocks) with a forced small tile -> exercises in-kernel tail masking,
    # multi-tile accumulation and the partially-valid last batch block.
    N2, C2, H2, W2 = 10, 3, 17, 19
    logits2 = jax.random.normal(k3, (N2, C2, H2, W2), dtype=jnp.float32)
    target2 = (jax.random.uniform(k4, (N2, C2, H2, W2)) > 0.5).astype(jnp.float32)
    ref2 = _reference(logits2, target2)
    loss2 = bce_dice_loss(logits2, target2, tile_d=256, approx_sigmoid=False)
    jax.block_until_ready(loss2)
    assert jnp.allclose(loss2, ref2, atol=1e-5, rtol=1e-5), (loss2, ref2)

    # Case 3: un-packed tiny-batch path (2 rows) with several feature tiles.
    ref3 = _reference(logits, target)
    loss3 = bce_dice_loss(logits, target, tile_d=256, pack_sublanes=False,
                          approx_sigmoid=False)
    jax.block_until_ready(loss3)
    assert jnp.allclose(loss3, ref3, atol=1e-5, rtol=1e-5), (loss3, ref3)

    # Case 4: narrow dtypes streamed straight into the kernel (bf16 logits and
    # bf16 0/1 targets) with the default packed configuration.
    logits4 = logits.astype(jnp.bfloat16)
    target4 = target.astype(jnp.bfloat16)
    ref4 = _reference(logits4, target4)
    loss4 = bce_dice_loss(logits4, target4)
    jax.block_until_ready(loss4)
    assert jnp.allclose(loss4, ref4, atol=5e-3, rtol=0.0), (loss4, ref4)

    print("KERNEL_OK")
</pallas_src>

<mosaic_0001>
module attributes {stable_mosaic.version = 11 : i64} {
  func.func @kernel(%arg0: i32, %arg1: i32, %arg2: memref<8x128xf32, #tpu.memory_space<vmem>>, %arg3: memref<8x128xf32, #tpu.memory_space<vmem>>, %arg4: memref<8x128xf32, #tpu.memory_space<vmem>>, %arg5: memref<8x128xf32, #tpu.memory_space<vmem>>, %arg6: memref<8x128xf32, #tpu.memory_space<vmem>>, %arg7: memref<8x128xf32, #tpu.memory_space<vmem>>) attributes {dimension_semantics = [#tpu.dimension_semantics<parallel>, #tpu.dimension_semantics<arbitrary>], iteration_bounds = array<i64: 2, 1>, scalar_prefetch = 0 : i64, scratch_operands = 0 : i64, tpu.core_type = #tpu.core_type<tc>, window_params = [{transform_indices = @transform_0, window_bounds = array<i64: 8, 128>}, {transform_indices = @transform_1, window_bounds = array<i64: 8, 128>}, {transform_indices = @transform_2, window_bounds = array<i64: 8, 128>}, {transform_indices = @transform_3, window_bounds = array<i64: 8, 128>}, {transform_indices = @transform_4, window_bounds = array<i64: 8, 128>}, {transform_indices = @transform_5, window_bounds = array<i64: 8, 128>}]} {
    %c0_i32 = arith.constant 0 : i32
    %0 = arith.cmpi eq, %arg1, %c0_i32 : i32
    %1 = arith.extui %0 : i1 to i32
    %c0_i32_0 = arith.constant 0 : i32
    %2 = arith.cmpi ne, %1, %c0_i32_0 : i32
    scf.if %2 {
      %cst_24 = arith.constant 0.000000e+00 : f32
      %45 = vector.broadcast %cst_24 : f32 to vector<8x128xf32>
      %c0_25 = arith.constant 0 : index
      %c0_26 = arith.constant 0 : index
      %46 = vector.load %arg4[%c0_25, %c0_26] : memref<8x128xf32, #tpu.memory_space<vmem>>, vector<8x128xf32>
      tpu.vector_store %arg4[%c0_25, %c0_26], %45 {strides = array<i32>} : memref<8x128xf32, #tpu.memory_space<vmem>>, vector<8x128xf32>,
      %cst_27 = arith.constant 0.000000e+00 : f32
      %47 = vector.broadcast %cst_27 : f32 to vector<8x128xf32>
      %c0_28 = arith.constant 0 : index
      %c0_29 = arith.constant 0 : index
      %48 = vector.load %arg5[%c0_28, %c0_29] : memref<8x128xf32, #tpu.memory_space<vmem>>, vector<8x128xf32>
      tpu.vector_store %arg5[%c0_28, %c0_29], %47 {strides = array<i32>} : memref<8x128xf32, #tpu.memory_space<vmem>>, vector<8x128xf32>,
      %cst_30 = arith.constant 0.000000e+00 : f32
      %49 = vector.broadcast %cst_30 : f32 to vector<8x128xf32>
      %c0_31 = arith.constant 0 : index
      %c0_32 = arith.constant 0 : index
      %50 = vector.load %arg6[%c0_31, %c0_32] : memref<8x128xf32, #tpu.memory_space<vmem>>, vector<8x128xf32>
      tpu.vector_store %arg6[%c0_31, %c0_32], %49 {strides = array<i32>} : memref<8x128xf32, #tpu.memory_space<vmem>>, vector<8x128xf32>,
      %cst_33 = arith.constant 0.000000e+00 : f32
      %51 = vector.broadcast %cst_33 : f32 to vector<8x128xf32>
      %c0_34 = arith.constant 0 : index
      %c0_35 = arith.constant 0 : index
      %52 = vector.load %arg7[%c0_34, %c0_35] : memref<8x128xf32, #tpu.memory_space<vmem>>, vector<8x128xf32>
      tpu.vector_store %arg7[%c0_34, %c0_35], %51 {strides = array<i32>} : memref<8x128xf32, #tpu.memory_space<vmem>>, vector<8x128xf32>,
    } else {
    }
    %cst = arith.constant 0.000000e+00 : f32
    %3 = vector.broadcast %cst : f32 to vector<8x128xf32>
    %c0_i32_1 = arith.constant 0 : i32
    %c128_i32 = arith.constant 128 : i32
    %4 = arith.muli %c0_i32_1, %c128_i32 : i32
    %5 = tpu.assume_multiple %4, 128 : i32
    %c0 = arith.constant 0 : index
    %6 = arith.index_cast %5 : i32 to index
    %7 = vector.load %arg2[%c0, %6] : memref<8x128xf32, #tpu.memory_space<vmem>>, vector<8x128xf32>
    %c0_2 = arith.constant 0 : index
    %8 = arith.index_cast %5 : i32 to index
    %9 = vector.load %arg3[%c0_2, %8] : memref<8x128xf32, #tpu.memory_space<vmem>>, vector<8x128xf32>
    %10 = math.absf %7 : vector<8x128xf32>
    %cst_3 = arith.constant 0.000000e+00 : f32
    %11 = vector.broadcast %cst_3 : f32 to vector<8x128xf32>
    %12 = arith.subf %11, %10 : vector<8x128xf32>
    %13 = math.exp %12 : vector<8x128xf32>
    %cst_4 = arith.constant 1.000000e+00 : f32
    %14 = vector.broadcast %cst_4 : f32 to vector<8x128xf32>
    %15 = arith.addf %14, %13 : vector<8x128xf32>
    %cst_5 = arith.constant 1.000000e+00 : f32
    %16 = vector.broadcast %cst_5 : f32 to vector<8x128xf32>
    %17 = arith.divf %16, %15 : vector<8x128xf32>
    %cst_6 = arith.constant 0.000000e+00 : f32
    %18 = vector.broadcast %cst_6 : f32 to vector<8x128xf32>
    %19 = arith.cmpf oge, %7, %18 : vector<8x128xf32>
    %20 = arith.mulf %13, %17 : vector<8x128xf32>
    %21 = arith.select %19, %17, %20 : vector<8x128xi1>, vector<8x128xf32>
    %cst_7 = arith.constant 0.000000e+00 : f32
    %22 = vector.broadcast %cst_7 : f32 to vector<8x128xf32>
    %23 = arith.maximumf %7, %22 : vector<8x128xf32>
    %24 = arith.mulf %7, %9 : vector<8x128xf32>
    %25 = arith.subf %23, %24 : vector<8x128xf32>
    %26 = math.log1p %13 : vector<8x128xf32>
    %27 = arith.addf %25, %26 : vector<8x128xf32>
    %28 = arith.addf %3, %27 : vector<8x128xf32>
    %29 = arith.mulf %21, %9 : vector<8x128xf32>
    %30 = arith.addf %3, %29 : vector<8x128xf32>
    %31 = arith.addf %3, %21 : vector<8x128xf32>
    %32 = arith.addf %3, %9 : vector<8x128xf32>
    %c1_i32 = arith.constant 1 : i32
    %c0_8 = arith.constant 0 : index
    %c0_9 = arith.constant 0 : index
    %33 = vector.load %arg4[%c0_8, %c0_9] : memref<8x128xf32, #tpu.memory_space<vmem>>, vector<8x128xf32>
    %34 = arith.addf %33, %28 : vector<8x128xf32>
    %c0_10 = arith.constant 0 : index
    %c0_11 = arith.constant 0 : index
    %35 = vector.load %arg4[%c0_10, %c0_11] : memref<8x128xf32, #tpu.memory_space<vmem>>, vector<8x128xf32>
    tpu.vector_store %arg4[%c0_10, %c0_11], %34 {strides = array<i32>} : memref<8x128xf32, #tpu.memory_space<vmem>>, vector<8x128xf32>,
    %c0_12 = arith.constant 0 : index
    %c0_13 = arith.constant 0 : index
    %36 = vector.load %arg5[%c0_12, %c0_13] : memref<8x128xf32, #tpu.memory_space<vmem>>, vector<8x128xf32>
    %37 = arith.addf %36, %30 : vector<8x128xf32>
    %c0_14 = arith.constant 0 : index
    %c0_15 = arith.constant 0 : index
    %38 = vector.load %arg5[%c0_14, %c0_15] : memref<8x128xf32, #tpu.memory_space<vmem>>, vector<8x128xf32>
    tpu.vector_store %arg5[%c0_14, %c0_15], %37 {strides = array<i32>} : memref<8x128xf32, #tpu.memory_space<vmem>>, vector<8x128xf32>,
    %c0_16 = arith.constant 0 : index
    %c0_17 = arith.constant 0 : index
    %39 = vector.load %arg6[%c0_16, %c0_17] : memref<8x128xf32, #tpu.memory_space<vmem>>, vector<8x128xf32>
    %40 = arith.addf %39, %31 : vector<8x128xf32>
    %c0_18 = arith.constant 0 : index
    %c0_19 = arith.constant 0 : index
    %41 = vector.load %arg6[%c0_18, %c0_19] : memref<8x128xf32, #tpu.memory_space<vmem>>, vector<8x128xf32>
    tpu.vector_store %arg6[%c0_18, %c0_19], %40 {strides = array<i32>} : memref<8x128xf32, #tpu.memory_space<vmem>>, vector<8x128xf32>,
    %c0_20 = arith.constant 0 : index
    %c0_21 = arith.constant 0 : index
    %42 = vector.load %arg7[%c0_20, %c0_21] : memref<8x128xf32, #tpu.memory_space<vmem>>, vector<8x128xf32>
    %43 = arith.addf %42, %32 : vector<8x128xf32>
    %c0_22 = arith.constant 0 : index
    %c0_23 = arith.constant 0 : index
    %44 = vector.load %arg7[%c0_22, %c0_23] : memref<8x128xf32, #tpu.memory_space<vmem>>, vector<8x128xf32>
    tpu.vector_store %arg7[%c0_22, %c0_23], %43 {strides = array<i32>} : memref<8x128xf32, #tpu.memory_space<vmem>>, vector<8x128xf32>,
    return
  }
  func.func @transform_0(%arg0: i32, %arg1: i32) -> (i32, i32) {
    %c0_i32 = arith.constant 0 : i32
    return %arg0, %arg1 : i32, i32
  }
  func.func @transform_1(%arg0: i32, %arg1: i32) -> (i32, i32) {
    %c0_i32 = arith.constant 0 : i32
    return %arg0, %arg1 : i32, i32
  }
  func.func @transform_2(%arg0: i32, %arg1: i32) -> (i32, i32) {
    %c0_i32 = arith.constant 0 : i32
    %c0_i32_0 = arith.constant 0 : i32
    return %arg0, %c0_i32 : i32, i32
  }
  func.func @transform_3(%arg0: i32, %arg1: i32) -> (i32, i32) {
    %c0_i32 = arith.constant 0 : i32
    %c0_i32_0 = arith.constant 0 : i32
    return %arg0, %c0_i32 : i32, i32
  }
  func.func @transform_4(%arg0: i32, %arg1: i32) -> (i32, i32) {
    %c0_i32 = arith.constant 0 : i32
    %c0_i32_0 = arith.constant 0 : i32
    return %arg0, %c0_i32 : i32, i32
  }
  func.func @transform_5(%arg0: i32, %arg1: i32) -> (i32, i32) {
    %c0_i32 = arith.constant 0 : i32
    %c0_i32_0 = arith.constant 0 : i32
    return %arg0, %c0_i32 : i32, i32
  }
}

</mosaic_0001>

<bundles_post_ra>
// kernel: tpu_custom_call.1
= control target key start
LH: loop header
LB: loop body
LE: loop exit
PB: predicated region body
PF: predicated region fallthrough
CT: control target
= control target key end

     0   :  { %11 = vsyncpa [#allocation3], 0  ;;  %s1268_s0 = inlined_call_operand.hbm [shape: f32[16,128], index: 0, kind: input, shape index: {}]   ;;  %s1269_s1 = inlined_call_operand.hbm [shape: f32[16,128], index: 1, kind: input, shape index: {}]   ;;  %s1270_s2 = inlined_call_operand.hbm [shape: f32[16,128], index: 2, kind: output, shape index: {0}]   ;;  %s1271_s3 = inlined_call_operand.hbm [shape: f32[16,128], index: 3, kind: output, shape index: {1}]   ;;  %s1272_s4 = inlined_call_operand.hbm [shape: f32[16,128], index: 4, kind: output, shape index: {2}]   ;;  %s1273_s5 = inlined_call_operand.hbm [shape: f32[16,128], index: 5, kind: output, shape index: {3}]  }
   0x1   :  { %13 = vsyncpa [#allocation3 + $0x1], 0 }
   0x2   :  { %14 = vsyncpa [#allocation6], 0 }
   0x3   :  { %16 = vsyncpa [#allocation6 + $0x1], 0 }
   0x4   :  { %17 = vsyncpa [#allocation4], 0 }
   0x5   :  { %19 = vsyncpa [#allocation4 + $0x1], 0 }
   0x6   :  { %20 = vsyncpa [#allocation9], 0 }
   0x7   :  { %22 = vsyncpa [#allocation9 + $0x1], 0 }
   0x8   :  { %23 = vsyncpa [#allocation12], 0 }
   0x9   :  { %25 = vsyncpa [#allocation12 + $0x1], 0  ;;  %s1046_s18 = smov 0   ;;  %s1048_s19 = smov 0  }
   0xa   :  { %s1050_s20 = smov 0   ;;  %s1052_s21 = smov 0  }
   0xb   :  { %s1054_s22 = smov 0   ;;  %s1056_s23 = smov 0  }
   0xc LB: > { %1277 = sst [smem:[#allocation18_spill]] %s1010_s22  ;;  %s1077_s24 = sadd.s32 4294967295, %s1014_s23   ;;  %s1014_s23 = sphi %s1056_s23, %s31_s23   ;;  %s1010_s22 = sphi %s1054_s22, %s1287_s22   ;;  %s1006_s21 = sphi %s1052_s21, %s1286_s21   ;;  %s1002_s20 = sphi %s1050_s20, %s1290_s20   ;;  %s998_s19 = sphi %s1048_s19, %s1289_s19   ;;  %s994_s18 = sphi %s1046_s18, %s1288_s18  }
   0xd   : > { %s1274_s25 = sadd.s32 4294967294, %s1014_s23   ;;  %s43_s26 = sadd.s32 1, %s1010_s22 }
   0xe   : > { %s52_s27 = sadd.s32 1, %s1002_s20  ;;  %p45_p0 = scmp.ge.s32.totalorder %s43_s26, 2 }
   0xf   : > { %p59_p1 = scmp.ne.s32.totalorder %s1002_s20, %s998_s19  ;;  %p60_p2 = scmp.eq.s32.totalorder %s1014_s23, 0 }
  0x10   : > { %p65_p3 = scmp.ne.s32.totalorder %s998_s19, %s994_s18  ;;  %s1292_s26 = smov (%p45_p0, %s43_s26), 0 }
  0x11   : > { %1278 = sst [smem:[#allocation19_spill]] %s1292_s26  ;;  %p1089_p4 = por %p60_p2, %p59_p1 }
  0x12   : > { %p66_p5 = scmp.eq.s32.totalorder %s1077_s24, 0  ;;  %s47_s29 = ssub.s32 %s1010_s22, %s1292_s26 }
  0x13   : > { %p117_p6 = scmp.eq.s32.totalorder %s1077_s24, 1  ;;  %p50_p7 = scmp.eq.s32.totalorder %s47_s29, 0 }
  0x14   : > { %p1097_p8 = por %p66_p5, %p65_p3  ;;  %p123_p10 = scmp.eq.s32.totalorder %s1274_s25, 1 }
  0x15   : > { %p1101_p9 = por %p117_p6, %p59_p1  ;;  %p665_p12 = scmp.ge.s32.totalorder %s1014_s23, 2 }
  0x16   : > { %s1108_s7 = scalar_select %p50_p7, %s1002_s20, %s52_s27  }
  0x17   : > { %p1110_p11 = por %p123_p10, %p65_p3  ;;  %p719_p13 = scmp.lt.s32.totalorder %s1014_s23, 2 }
  0x18   : > { %1282 = sst [smem:[#allocation20_spill]] %s1108_s7  ;;  %s221_s9 = sand.u32 1, %s1002_s20  }
  0x19   : > { %s666_s10 = sshll.u32 %s221_s9, 3  ;;  %s667_s11 = sshll.u32 %s1010_s22, 3 }
  0x1a   : > { %s230_s14 = scalar_lea.hbm %s1268_s0, %s667_s11  ;;  %s225_s15 = scalar_lea.vmem [#allocation2], %s666_s10 }
  0x1b   : > { %s234_s16 = sshll.u32 %s225_s15, 4  ;;  %s232_s17 = sshll.u32 %s230_s14, 4  ;;  %s235_s16 = int_to_ptr.vmem [resolvable:$true] %s234_s16  ;;  %s233_s17 = int_to_ptr.hbm [resolvable:$true] %s232_s17 }
  0x1c   : > { %p700_p0 = pnand %p719_p13, %p1089_p4  ;;  %p670_p1 = scmp.ge.s32.totalorder %s1014_s23, 1 }
  0x1d   : > { %p259_p2 = scmp.lt.s32.totalorder %s1014_s23, 3  ;;  %s222_s27 = scalar_lea.sflag [#allocation3], %s221_s9 }
  0x1e   : > { %702 = dma.hbm_to_vmem [thread:$0]  (!%p700_p0), %s233_s17, 128, %s235_s16, %s222_s27  }
  0x1f   : > { %p260_p3 = pnand %p670_p1, %p259_p2  ;;  %s250_s26 = scalar_lea.hbm %s1269_s1, %s667_s11 }
  0x20   : > { %s245_s22 = scalar_lea.vmem [#allocation5], %s666_s10  ;;  %s252_s12 = sshll.u32 %s250_s26, 4  ;;  %s253_s12 = int_to_ptr.hbm [resolvable:$true] %s252_s12 }
  0x21   : > { %s254_s7 = sshll.u32 %s245_s22, 4  ;;  %s242_s13 = scalar_lea.sflag [#allocation6], %s221_s9  ;;  %s255_s7 = int_to_ptr.vmem [resolvable:$true] %s254_s7 }
  0x22   : > { %705 = dma.hbm_to_vmem [thread:$0]  (!%p700_p0), %s253_s12, 128, %s255_s7, %s242_s13  }
  0x23   : > { %263 = sbr.rel (%p260_p3) target bundleno = 107 (0x6b), region = 28  ;;  %s1129_s28 = sand.u32 (!%p260_p3), 1, %s998_s19  }
  0x24   : > { %s1132_s14 = sshll.u32 (!%p260_p3), %s1129_s28, 3  ;;  %s266_s15 = scalar_lea.sflag (!%p260_p3), [#allocation3], %s1129_s28 }
  0x25   : > { %s269_s25 = scalar_lea.vmem (!%p260_p3), [#allocation2], %s1132_s14 }
  0x28   : > { %973 = dma.done.wait (%p1097_p8), %s266_s15, 128  }
  0x29   : > { %975 = vsyncadd (%p1097_p8), %s266_s15, 4294967168  ;;  %s276_s22 = scalar_lea.sflag [#allocation6], %s1129_s28  ;;  %s279_s26 = scalar_lea.vmem [#allocation5], %s1132_s14 }
  0x2a   : > { %977 = dma.done.wait (%p1097_p8), %s276_s22, 128  }
  0x2b   : > { %979 = vsyncadd (%p1097_p8), %s276_s22, 4294967168  ;;  %v1146_v0 = vld [vmem:[%s269_s25] sm:$0xff]  ;;  %s1150_s7 = sshll.u32 %s1006_s21, 3  ;;  %s326_s16 = scalar_lea.vmem [#allocation11], %s1132_s14  ;;  %v1157_v4 = vld [vmem:[%s279_s26] sm:$0xff] }
  0x2c   : > { %v337_v1 = vand.u32 2147483647, %v1146_v0  ;;  %s458_s11 = scalar_lea.hbm %s1273_s5, %s1150_s7  ;;  %s460_s30 = sshll.u32 %s326_s16, 4  ;;  %389 = vst [vmem:[%s326_s16] sm:$0xff] %v1157_v4  ;;  %s461_s30 = int_to_ptr.vmem [resolvable:$true] %s460_s30 }
  0x2d   : > { %s462_s17 = sshll.u32 %s458_s11, 4  ;;  %s406_s21 = scalar_lea.sflag [#allocation12], %s1129_s28  ;;  %s463_s17 = int_to_ptr.hbm [resolvable:$true] %s462_s17 }
  0x2e   : > { %v338_v2 = vsub.f32 0.0, %v337_v1  ;;  %s850_s27 = sshra.s32 %s463_s17, 4  ;;  %s856_s15 = scalar_lea.hbm %s1273_s5, 16  ;;  %s851_s27 = int_to_ptr.hbm [resolvable:$true] %s850_s27 }
  0x2f   : > { %s852_s29 = scalar_lea.hbm %s851_s27, 8  ;;  %p857_p7 = scmp.lt.s32.totalorder %s851_s27, %s1273_s5 }
  0x30   : > { %v339_v3 = vmul.f32 1.442695, %v338_v2  ;;  %p853_p4 = scmp.ne.s32.totalorder %s851_s27, %s852_s29  ;;  %p858_p8 = scmp.lt.s32.totalorder %s856_s15, %s852_s29 }
  0x32   : > { %770 = vpow2.f32 %v339_v3  ;;  %p854_p5 = pnand %p853_p4, %p1101_p9  ;;  %p859_p10 = por %p858_p8, %p857_p7 }
  0x34   : > { %p855_p6 = pneg %p854_p5 }
  0x36   : > { %p860_p13 = pnand %p859_p10, %p855_p6 }
  0x38   : > { %863 = shalt.err (!%p860_p13)
}
  0x39   : > { %694 = dma.vmem_to_hbm [thread:$0]  (%p1101_p9), %s461_s30, 128, %s463_s17, %s406_s21   ;;  %v771_v5 = vpop.eup %770  ;;  %v360_v9 = vmax.f32 %v1146_v0, 0.0  ;;  %v361_v10 = vmul.f32 %v1157_v4, %v1146_v0  ;;  %vm357_vm5 = vcmp.ge.f32.partialorder %v1146_v0, 0.0 }
  0x3a   : > { %v341_v6 = vadd.f32 1.0, %v771_v5  ;;  %v366_v7 = vmul.f32 -0.5, %v771_v5  ;;  %v369_v11 = vand.u32 2147483647, %v771_v5  ;;  %s416_s10 = scalar_lea.hbm %s1270_s2, %s1150_s7  ;;  %s305_s11 = scalar_lea.vmem [#allocation7], %s1132_s14 }
  0x3b   : > { %v362_v16 = vsub.f32 %v360_v9, %v361_v10  ;;  %s1179_s16 = sshll.u32 %s305_s11, 4  ;;  %s1181_s30 = sshll.u32 %s416_s10, 4  ;;  %s419_s16 = int_to_ptr.vmem [resolvable:$true] %s1179_s16  ;;  %s421_s30 = int_to_ptr.hbm [resolvable:$true] %s1181_s30 }
  0x3c   : > { %772 = vrcp.f32 %v341_v6  ;;  %v367_v8 = vadd.f32 1.0, %v366_v7  ;;  %vm370_vm0 = vcmp.lt.f32.partialorder %v369_v11, 0.0004427343  ;;  %v353_v17 = vand.u32 2147483648, %v341_v6  ;;  %s430_s27 = scalar_lea.hbm %s1271_s3, %s1150_s7  ;;  %s391_s29 = scalar_lea.sflag [#allocation4], %s1129_s28 }
  0x3d   : > { %774 = vlog2.f32 %v341_v6  ;;  %vm347_vm1 = vweird.f32 %v341_v6  ;;  %v351_v20 = vand.u32 2147483647, %v341_v6  ;;  %s878_s12 = sshra.s32 %s421_s30, 4  ;;  %s884_s22 = scalar_lea.hbm %s1270_s2, 16  ;;  %s879_s12 = int_to_ptr.hbm [resolvable:$true] %s878_s12 }
  0x3e   : > { %v368_v13 = vmul.f32 %v771_v5, %v367_v8  ;;  %v354_v24 = vor.u32 1.1754944e-38, %v353_v17  ;;  %s880_s13 = scalar_lea.hbm %s879_s12, 8  ;;  %p885_p3 = scmp.lt.s32.totalorder %s879_s12, %s1270_s2 }
  0x3f   : > { %vm352_vm4 = vcmp.eq.f32.partialorder %v351_v20, 8.507059e+37  ;;  %p881_p0 = scmp.ne.s32.totalorder %s879_s12, %s880_s13  ;;  %p886_p4 = scmp.lt.s32.totalorder %s884_s22, %s880_s13 }
  0x41   : > { %p882_p1 = pnand %p881_p0, %p1101_p9  ;;  %p887_p5 = por %p886_p4, %p885_p3 }
  0x42   : > { %v773_v12 = vpop.eup %772 }
  0x43   : > { %v775_v14 = vpop.eup %774  ;;  %v343_v15 = vmul.f32 %v773_v12, %v341_v6  ;;  %vm348_vm2 = vweird.f32 %v773_v12  ;;  %p883_p2 = pneg %p882_p1 }
  0x44   : > { %v365_v18 = vmul.f32 0.6931472, %v775_v14  ;;  %vm349_vm3 = vmor %vm347_vm1, %vm348_vm2 }
  0x45   : > { %v344_v19 = vsub.f32 1.0, %v343_v15  ;;  %p888_p6 = pnand %p887_p5, %p883_p2 }
  0x46   : > { %v371_v21 = vsel %vm370_vm0, %v368_v13, %v365_v18 }
  0x47   : > { %v345_v22 = vmul.f32 %v773_v12, %v344_v19  ;;  %v372_v23 = vadd.f32 %v371_v21, %v362_v16 }
  0x49   : > { %v346_v25 = vadd.f32 %v773_v12, %v345_v22  ;;  %380 = vst [vmem:[%s305_s11] sm:$0xff] %v372_v23 }
  0x4b   : > { %v350_v26 = vsel %vm349_vm3, %v773_v12, %v346_v25 }
  0x4c   : > { %v355_v27 = vsel %vm352_vm4, %v354_v24, %v350_v26 }
  0x4d   : > { %891 = shalt.err (!%p888_p6)
}
  0x4e   : > { %691 = dma.vmem_to_hbm [thread:$0]  (%p1101_p9), %s419_s16, 128, %s421_s30, %s391_s29   ;;  %v358_v28 = vmul.f32 %v771_v5, %v355_v27 }
  0x4f   : > { %s444_s11 = scalar_lea.hbm %s1272_s4, %s1150_s7  ;;  %s395_s17 = sand.u32 1, %s1077_s24  }
  0x50   : > { %v359_v29 = vsel %vm357_vm5, %v355_v27, %v358_v28  ;;  %s312_s21 = scalar_lea.vmem [#allocation8], %s1132_s14  ;;  %s434_s13 = sshll.u32 %s430_s27, 4  ;;  %s435_s13 = int_to_ptr.hbm [resolvable:$true] %s434_s13 }
  0x51   : > { %s432_s12 = sshll.u32 %s312_s21, 4  ;;  %s319_s15 = scalar_lea.vmem [#allocation10], %s1132_s14  ;;  %v374_v30 = vmul.f32 %v359_v29, %v1157_v4  ;;  %s433_s12 = int_to_ptr.vmem [resolvable:$true] %s432_s12 }
  0x52   : > { %s1210_s25 = sshll.u32 %s319_s15, 4  ;;  %s1213_s16 = sshll.u32 %s444_s11, 4  ;;  %386 = vst [vmem:[%s319_s15] sm:$0xff] %v359_v29  ;;  %s447_s25 = int_to_ptr.vmem [resolvable:$true] %s1210_s25  ;;  %s449_s16 = int_to_ptr.hbm [resolvable:$true] %s1213_s16 }
  0x53   : > { %383 = vst [vmem:[%s312_s21] sm:$0xff] %v374_v30  ;;  %s396_s24 = scalar_lea.sflag [#allocation9], %s395_s17  ;;  %s906_s7 = sshra.s32 %s435_s13, 4  ;;  %s907_s7 = int_to_ptr.hbm [resolvable:$true] %s906_s7 }
  0x54   : > { %s908_s30 = scalar_lea.hbm %s907_s7, 8  ;;  %s912_s29 = scalar_lea.hbm %s1271_s3, 16 }
  0x55   : > { %p909_p7 = scmp.ne.s32.totalorder %s907_s7, %s908_s30  ;;  %p913_p13 = scmp.lt.s32.totalorder %s907_s7, %s1271_s3 }
  0x56   : > { %p914_p0 = scmp.lt.s32.totalorder %s912_s29, %s908_s30 }
  0x57   : > { %p910_p8 = pnand %p909_p7, %p1101_p9 }
  0x58   : > { %p915_p1 = por %p914_p0, %p913_p13 }
  0x59   : > { %p911_p10 = pneg %p910_p8 }
  0x5b   : > { %p916_p2 = pnand %p915_p1, %p911_p10 }
  0x5d   : > { %919 = shalt.err (!%p916_p2)
}
  0x5e   : > { %692 = dma.vmem_to_hbm [thread:$0]  (%p1101_p9), %s433_s12, 128, %s435_s13, %s396_s24  }
  0x5f   : > { %s934_s9 = sshra.s32 %s449_s16, 4  ;;  %s940_s17 = scalar_lea.hbm %s1272_s4, 16  ;;  %s935_s9 = int_to_ptr.hbm [resolvable:$true] %s934_s9 }
  0x60   : > { %s936_s28 = scalar_lea.hbm %s935_s9, 8  ;;  %p941_p6 = scmp.lt.s32.totalorder %s935_s9, %s1272_s4 }
  0x61   : > { %p937_p3 = scmp.ne.s32.totalorder %s935_s9, %s936_s28  ;;  %p942_p7 = scmp.lt.s32.totalorder %s940_s17, %s936_s28 }
  0x63   : > { %p938_p4 = pnand %p937_p3, %p1101_p9  ;;  %p943_p8 = por %p942_p7, %p941_p6 }
  0x65   : > { %p939_p5 = pneg %p938_p4 }
  0x67   : > { %p944_p10 = pnand %p943_p8, %p939_p5 }
  0x69   : > { %947 = shalt.err (!%p944_p10)
}
  0x6a   : > { %693 = dma.vmem_to_hbm [thread:$0]  (%p1101_p9), %s447_s25, 128, %s449_s16, %s396_s24  }
  0x6b PF: > { %s474_s12 = sand.u32 1, %s994_s18   ;;  %p707_p13 = pnand %p665_p12, %p1110_p11 }
  0x6c   : > { %s475_s13 = scalar_lea.sflag [#allocation4], %s474_s12 }
  0x6d   : > { %p708_p0 = pneg %p707_p13 }
  0x6f   : > { %981 = dma.done.wait (%p708_p0), %s475_s13, 128  }
  0x70   : > { %983 = vsyncadd (%p708_p0), %s475_s13, 4294967168  ;;  %s1284_s7 = sadd.s32 4294967294, %s1014_s23  }
  0x71   : > { %s484_s6 = sand.u32 1, %s1284_s7  }
  0x72   : > { %s485_s30 = scalar_lea.sflag [#allocation9], %s484_s6 }
  0x73   : > { %985 = dma.done.wait (%p708_p0), %s485_s30, 256  }
  0x74   : > { %987 = vsyncadd (%p708_p0), %s485_s30, 4294967040  ;;  %s505_s14 = scalar_lea.sflag [#allocation12], %s474_s12 }
  0x75   : > { %989 = dma.done.wait (%p708_p0), %s505_s14, 128  }
  0x76   : > { %991 = vsyncadd (%p708_p0), %s505_s14, 4294967168  ;;  %s31_s23 = sadd.s32 1, %s1014_s23   ;;  %s1285_s8 = sld [smem:[#allocation20_spill]] }
  0x77   : > { %p28_p9 = scmp.ge.s32.totalorder %s31_s23, 4   ;;  %s1286_s21 = sld [smem:[#allocation18_spill]] }
  0x78   : > { %s1287_s22 = sld [smem:[#allocation19_spill]]  ;;  %s1288_s18 = smov %s998_s19 }
  0x79   : > { %s1289_s19 = smov %s1002_s20  ;;  %30 = sbr.rel (!%p28_p9) target bundleno = 12 (0xc), region = 139 }
  0x7c   : > { %s1290_s20 = smov %s1285_s8 }
  0x7e   :  { %511 = vsyncpa [#allocation3], 1 }
  0x7f   :  { %513 = vsyncpa [#allocation3 + $0x1], 1 }
  0x80   :  { %514 = vsyncpa [#allocation6], 1 }
  0x81   :  { %516 = vsyncpa [#allocation6 + $0x1], 1 }
  0x82   :  { %517 = vsyncpa [#allocation4], 1 }
  0x83   :  { %519 = vsyncpa [#allocation4 + $0x1], 1 }
  0x84   :  { %520 = vsyncpa [#allocation9], 1 }
  0x85   :  { %522 = vsyncpa [#allocation9 + $0x1], 1 }
  0x86   :  { %523 = vsyncpa [#allocation12], 1 }
  0x87   :  { %525 = vsyncpa [#allocation12 + $0x1], 1 }

</bundles_post_ra>
